<compile_context>
chip_gen: v6e
topology: v6e:2x2x1
jax: 0.10.0
libtpu: 0.0.40
codegen_flags: <defaults>
</compile_context>

<pallas_src>
import functools

import jax
import jax.numpy as jnp
from jax.experimental import pallas as pl
from jax.experimental.pallas import tpu as pltpu


# ----------------------------------------------------------------------------
# Synthetic backbone config (mimics backbone.embed_dim / backbone.out_channels)
# ----------------------------------------------------------------------------
EMBED_DIM = 128  # Swin-Base-like; makes out_c a multiple of 128 (lane-dense)
# (depth, channel_count) per feature scale, like SatlasNet Swin backbones.
BACKBONE_OUT_CHANNELS = [(4, EMBED_DIM), (8, EMBED_DIM * 2)]
GROUPS = [[0, 1, 2, 3, 4, 5, 6, 7]]  # single group -> cat along channels is trivial

_LANES = 128
_MIN_TILE_ROWS = 16                      # bf16 vregs pack (16, 128)
_ROW_TILE_MAX = 2048                     # hard cap; budget below usually binds first
_VMEM_BUDGET_BYTES = 20 * 1024 * 1024    # conservative per-generation working set
_VMEM_LIMIT_BYTES = 32 * 1024 * 1024     # raise v5e's 16 MiB default scoped limit


def _round_up(v, m):
    return ((v + m - 1) // m) * m


# ----------------------------------------------------------------------------
# Pallas kernel: one long-M patch-embed matmul + VPU max over slices + bias
# ----------------------------------------------------------------------------
def _scale_kernel(x_ref, w_ref, b_ref, o_ref):
    # x_ref: (G, TR, K)   bf16  -- patches of all G slices for this row tile
    # w_ref: (K, out_cp)  bf16
    # b_ref: (1, out_cp)  f32
    # o_ref: (TR, out_cp) f32
    g, tr, k = x_ref.shape
    out_cp = o_ref.shape[-1]
    # Single long-M MXU matmul: (G*TR, K) @ (K, out_cp), f32 accumulation.
    x2d = x_ref[...].reshape(g * tr, k)
    y = jnp.dot(x2d, w_ref[...], preferred_element_type=jnp.float32)
    # Max over the slice axis is elementwise across vregs (VPU), then bias.
    y = y.reshape(g, tr, out_cp)
    o_ref[...] = jnp.max(y, axis=0) + b_ref[...]


def _fused_scale(patches, w, b, row_tile):
    """patches: (G, rows_p, K) bf16, w: (K, out_cp) bf16, b: (1, out_cp) f32
    -> (rows_p, out_cp) f32, max-aggregated over the G slices."""
    g, rows_p, k = patches.shape
    out_cp = w.shape[1]
    grid = (rows_p // row_tile,)
    return pl.pallas_call(
        _scale_kernel,
        out_shape=jax.ShapeDtypeStruct((rows_p, out_cp), jnp.float32),
        grid_spec=pltpu.PrefetchScalarGridSpec(
            num_scalar_prefetch=0,
            grid=grid,
            in_specs=[
                pl.BlockSpec((g, row_tile, k), lambda r: (0, r, 0)),
                pl.BlockSpec((k, out_cp), lambda r: (0, 0)),
                pl.BlockSpec((1, out_cp), lambda r: (0, 0)),
            ],
            out_specs=pl.BlockSpec((row_tile, out_cp), lambda r: (r, 0)),
        ),
        compiler_params=pltpu.CompilerParams(
            dimension_semantics=("parallel",),
            vmem_limit_bytes=_VMEM_LIMIT_BYTES,
        ),
    )(patches, w, b)


# ----------------------------------------------------------------------------
# Glue: tile sizing, patch extraction (single relayout), parameters
# ----------------------------------------------------------------------------
def _pick_row_tile(rows, n_slices, K, out_cp):
    """Largest multiple-of-16 row tile whose VMEM working set fits the budget:
    2x double-buffered bf16 patches + 2x f32 output + f32 matmul result."""
    per_row = 2 * n_slices * K * 2 + 2 * out_cp * 4 + n_slices * out_cp * 4
    cap = max(_MIN_TILE_ROWS,
              (_VMEM_BUDGET_BYTES // per_row) // _MIN_TILE_ROWS * _MIN_TILE_ROWS)
    cap = min(cap, _ROW_TILE_MAX)
    if rows > cap:
        return cap
    # Small problem: still give the "parallel" row axis >= 2 tiles when
    # possible so both v7x TensorCores get work.
    if rows >= 2 * _MIN_TILE_ROWS:
        return _round_up(-(-rows // 2), _MIN_TILE_ROWS)
    return _round_up(rows, _MIN_TILE_ROWS)


def _extract_patches(x_imgs, depth):
    """x_imgs: (B, G, C, H, W) f32 -> (G, B*Hs*Ws, C*d*d) bf16 via a single
    fused transpose + cast copy (the only HBM relayout before the kernel)."""
    B, G, C, H, W = x_imgs.shape
    Hs, Ws = H // depth, W // depth
    p = x_imgs.reshape(B, G, C, Hs, depth, Ws, depth)
    # TODO(synk): fuse this relayout into the kernel (raw input via
    # memory_space=pl.ANY + manual make_async_copy of (C, d, W) slabs and
    # in-VMEM relayout) to remove this HBM-materialized intermediate.
    p = p.transpose(1, 0, 3, 5, 2, 4, 6).astype(jnp.bfloat16)  # (G,B,Hs,Ws,C,d,d)
    return p.reshape(G, B * Hs * Ws, C * depth * depth), (B, Hs, Ws)


def init_params(key, num_channels):
    params = []
    for i, (depth, out_c) in enumerate(BACKBONE_OUT_CHANNELS):
        k_w, k_b = jax.random.split(jax.random.fold_in(key, i))
        K = num_channels * depth * depth
        w = jax.random.normal(k_w, (K, out_c), jnp.float32) * 0.05
        b = jax.random.normal(k_b, (1, out_c), jnp.float32) * 0.01
        params.append((w, b))
    return params


@functools.partial(jax.jit, static_argnums=(2,))
def aggregation_backbone_forward(x, params, num_channels):
    """x: (B, C, T, H, W). Returns list of (B, out_c, Hs, Ws), one per scale."""
    B, C, T, H, W = x.shape
    assert C == num_channels
    # Module: x.reshape(B, C*T, H, W) sliced every `num_channels` channels.
    # That slicing is exactly a reshape to (B, G, num_channels, H, W) -- no
    # transpose needed here.  groups=[[0..7]] -> first min(G, 8) slices.
    G = (C * T) // num_channels
    n_use = min(G, len(GROUPS[0]))
    x_imgs = x.reshape(B, G, num_channels, H, W)[:, :n_use]

    outputs = []
    for (depth, out_c), (w, b) in zip(BACKBONE_OUT_CHANNELS, params):
        patches, (Bs, Hs, Ws) = _extract_patches(x_imgs, depth)  # (G, rows, K)
        n, rows, K = patches.shape

        # Lane-dense output: pad out_c to a multiple of 128 with zero weight
        # columns (max of zeros + zero bias; sliced away below).  K is left
        # unpadded on purpose (HBM-bound; see header).
        out_cp = _round_up(out_c, _LANES)
        w_p = jnp.pad(w.astype(jnp.bfloat16), ((0, 0), (0, out_cp - out_c)))
        b_p = jnp.pad(b, ((0, 0), (0, out_cp - out_c)))

        # Row tiling: multiples of 16, VMEM-budgeted, >= 2 tiles when possible.
        row_tile = _pick_row_tile(rows, n, K, out_cp)
        rows_p = _round_up(rows, row_tile)
        if rows_p != rows:
            patches = jnp.pad(patches, ((0, 0), (0, rows_p - rows), (0, 0)))

        agg = _fused_scale(patches, w_p, b_p, row_tile)     # (rows_p, out_cp) f32
        agg = agg[:rows, :out_c].reshape(Bs, Hs, Ws, out_c)
        # TODO(synk): keep channels-last if the consumer accepts it; this NCHW
        # transpose is an extra HBM round trip kept only for module parity.
        agg = jnp.transpose(agg, (0, 3, 1, 2))              # ngroups=1 -> no cat
        outputs.append(agg)
    return outputs


def reference_forward(x, params, num_channels):
    """Pure-JAX reference matching the module semantics, using the same bf16
    input/weight quantization as the kernel (f32 accumulation)."""
    B, C, T, H, W = x.shape
    G = (C * T) // num_channels
    n_use = min(G, len(GROUPS[0]))
    x_imgs = x.reshape(B, G, num_channels, H, W)[:, :n_use]
    outs = []
    for (depth, out_c), (w, b) in zip(BACKBONE_OUT_CHANNELS, params):
        patches, (Bs, Hs, Ws) = _extract_patches(x_imgs, depth)
        patches = patches.astype(jnp.float32)
        w_q = w.astype(jnp.bfloat16).astype(jnp.float32)
        per_img = jnp.einsum("grk,ko->gro", patches, w_q,
                             preferred_element_type=jnp.float32) + b[None]
        agg = jnp.max(per_img, axis=0)                      # amax over slices
        agg = agg.reshape(Bs, Hs, Ws, out_c).transpose(0, 3, 1, 2)
        outs.append(agg)
    return outs


if __name__ == "__main__":
    key = jax.random.PRNGKey(0)
    B, C, T, H, W = 2, 4, 8, 16, 16
    k_x, k_p = jax.random.split(key)
    x = jax.random.normal(k_x, (B, C, T, H, W), jnp.float32)
    params = init_params(k_p, C)

    outs = aggregation_backbone_forward(x, params, C)
    outs = jax.block_until_ready(outs)

    refs = reference_forward(x, params, C)
    for o, r in zip(outs, refs):
        assert o.shape == r.shape, (o.shape, r.shape)
        assert jnp.allclose(o, r, atol=2e-3, rtol=2e-3), "mismatch vs reference"

    print("KERNEL_OK")
</pallas_src>

<mosaic_0001>
module attributes {stable_mosaic.version = 11 : i64} {
  func.func @_scale_kernel(%arg0: i32, %arg1: memref<8x16x256xbf16, #tpu.memory_space<vmem>>, %arg2: memref<256x256xbf16, #tpu.memory_space<vmem>>, %arg3: memref<1x256xf32, #tpu.memory_space<vmem>>, %arg4: memref<16x256xf32, #tpu.memory_space<vmem>>) attributes {dimension_semantics = [#tpu.dimension_semantics<parallel>], iteration_bounds = array<i64: 1>, scalar_prefetch = 0 : i64, scratch_operands = 0 : i64, tpu.core_type = #tpu.core_type<tc>, window_params = [{transform_indices = @transform_0, window_bounds = array<i64: 8, 16, 256>}, {pipeline_mode = #tpu.pipeline_mode<synchronous>, transform_indices = @transform_1, window_bounds = array<i64: 256, 256>}, {pipeline_mode = #tpu.pipeline_mode<synchronous>, transform_indices = @transform_2, window_bounds = array<i64: 1, 256>}, {transform_indices = @transform_3, window_bounds = array<i64: 16, 256>}]} {
    %c0 = arith.constant 0 : index
    %c0_0 = arith.constant 0 : index
    %c0_1 = arith.constant 0 : index
    %0 = vector.load %arg1[%c0, %c0_0, %c0_1] : memref<8x16x256xbf16, #tpu.memory_space<vmem>>, vector<8x16x256xbf16>
    %1 = vector.shape_cast %0 : vector<8x16x256xbf16> to vector<128x256xbf16>
    %c0_2 = arith.constant 0 : index
    %c0_3 = arith.constant 0 : index
    %2 = vector.load %arg2[%c0_2, %c0_3] : memref<256x256xbf16, #tpu.memory_space<vmem>>, vector<256x256xbf16>
    %cst = arith.constant dense<0.000000e+00> : vector<128x256xf32>
    %3 = tpu.matmul %1, %2, %cst {dimension_numbers = #tpu.dot_dimension_numbers<[1], [0], [0], [1], [0, 0, 1, 1], [], []>} : vector<128x256xbf16>, vector<256x256xbf16>, vector<128x256xf32> -> vector<128x256xf32>
    %4 = vector.shape_cast %3 : vector<128x256xf32> to vector<8x16x256xf32>
    %cst_4 = arith.constant dense<0xFF800000> : vector<16x256xf32>
    %5 = vector.multi_reduction <maximumf>, %4, %cst_4 [0] : vector<8x16x256xf32> to vector<16x256xf32>
    %c0_5 = arith.constant 0 : index
    %c0_6 = arith.constant 0 : index
    %6 = vector.load %arg3[%c0_5, %c0_6] : memref<1x256xf32, #tpu.memory_space<vmem>>, vector<1x256xf32>
    %7 = vector.broadcast %6 : vector<1x256xf32> to vector<16x256xf32>
    %8 = arith.addf %5, %7 : vector<16x256xf32>
    %c0_7 = arith.constant 0 : index
    %c0_8 = arith.constant 0 : index
    %9 = vector.load %arg4[%c0_7, %c0_8] : memref<16x256xf32, #tpu.memory_space<vmem>>, vector<16x256xf32>
    tpu.vector_store %arg4[%c0_7, %c0_8], %8 {strides = array<i32>} : memref<16x256xf32, #tpu.memory_space<vmem>>, vector<16x256xf32>,
    return
  }
  func.func @transform_0(%arg0: i32) -> (i32, i32, i32) {
    %c0_i32 = arith.constant 0 : i32
    %c0_i32_0 = arith.constant 0 : i32
    %c0_i32_1 = arith.constant 0 : i32
    return %c0_i32, %arg0, %c0_i32_0 : i32, i32, i32
  }
  func.func @transform_1(%arg0: i32) -> (i32, i32) {
    %c0_i32 = arith.constant 0 : i32
    %c0_i32_0 = arith.constant 0 : i32
    %c0_i32_1 = arith.constant 0 : i32
    return %c0_i32, %c0_i32_0 : i32, i32
  }
  func.func @transform_2(%arg0: i32) -> (i32, i32) {
    %c0_i32 = arith.constant 0 : i32
    %c0_i32_0 = arith.constant 0 : i32
    %c0_i32_1 = arith.constant 0 : i32
    return %c0_i32, %c0_i32_0 : i32, i32
  }
  func.func @transform_3(%arg0: i32) -> (i32, i32) {
    %c0_i32 = arith.constant 0 : i32
    %c0_i32_0 = arith.constant 0 : i32
    return %arg0, %c0_i32 : i32, i32
  }
}

module attributes {stable_mosaic.version = 11 : i64} {
  func.func @_scale_kernel(%arg0: i32, %arg1: memref<8x16x64xbf16, #tpu.memory_space<vmem>>, %arg2: memref<64x128xbf16, #tpu.memory_space<vmem>>, %arg3: memref<1x128xf32, #tpu.memory_space<vmem>>, %arg4: memref<16x128xf32, #tpu.memory_space<vmem>>) attributes {dimension_semantics = [#tpu.dimension_semantics<parallel>], iteration_bounds = array<i64: 2>, scalar_prefetch = 0 : i64, scratch_operands = 0 : i64, tpu.core_type = #tpu.core_type<tc>, window_params = [{transform_indices = @transform_0, window_bounds = array<i64: 8, 16, 64>}, {pipeline_mode = #tpu.pipeline_mode<synchronous>, transform_indices = @transform_1, window_bounds = array<i64: 64, 128>}, {pipeline_mode = #tpu.pipeline_mode<synchronous>, transform_indices = @transform_2, window_bounds = array<i64: 1, 128>}, {transform_indices = @transform_3, window_bounds = array<i64: 16, 128>}]} {
    %c0 = arith.constant 0 : index
    %c0_0 = arith.constant 0 : index
    %c0_1 = arith.constant 0 : index
    %0 = vector.load %arg1[%c0, %c0_0, %c0_1] : memref<8x16x64xbf16, #tpu.memory_space<vmem>>, vector<8x16x64xbf16>
    %1 = vector.shape_cast %0 : vector<8x16x64xbf16> to vector<128x64xbf16>
    %c0_2 = arith.constant 0 : index
    %c0_3 = arith.constant 0 : index
    %2 = vector.load %arg2[%c0_2, %c0_3] : memref<64x128xbf16, #tpu.memory_space<vmem>>, vector<64x128xbf16>
    %cst = arith.constant dense<0.000000e+00> : vector<128x128xf32>
    %3 = tpu.matmul %1, %2, %cst {dimension_numbers = #tpu.dot_dimension_numbers<[1], [0], [0], [1], [0, 0, 1, 1], [], []>} : vector<128x64xbf16>, vector<64x128xbf16>, vector<128x128xf32> -> vector<128x128xf32>
    %4 = vector.shape_cast %3 : vector<128x128xf32> to vector<8x16x128xf32>
    %cst_4 = arith.constant dense<0xFF800000> : vector<16x128xf32>
    %5 = vector.multi_reduction <maximumf>, %4, %cst_4 [0] : vector<8x16x128xf32> to vector<16x128xf32>
    %c0_5 = arith.constant 0 : index
    %c0_6 = arith.constant 0 : index
    %6 = vector.load %arg3[%c0_5, %c0_6] : memref<1x128xf32, #tpu.memory_space<vmem>>, vector<1x128xf32>
    %7 = vector.broadcast %6 : vector<1x128xf32> to vector<16x128xf32>
    %8 = arith.addf %5, %7 : vector<16x128xf32>
    %c0_7 = arith.constant 0 : index
    %c0_8 = arith.constant 0 : index
    %9 = vector.load %arg4[%c0_7, %c0_8] : memref<16x128xf32, #tpu.memory_space<vmem>>, vector<16x128xf32>
    tpu.vector_store %arg4[%c0_7, %c0_8], %8 {strides = array<i32>} : memref<16x128xf32, #tpu.memory_space<vmem>>, vector<16x128xf32>,
    return
  }
  func.func @transform_0(%arg0: i32) -> (i32, i32, i32) {
    %c0_i32 = arith.constant 0 : i32
    %c0_i32_0 = arith.constant 0 : i32
    %c0_i32_1 = arith.constant 0 : i32
    return %c0_i32, %arg0, %c0_i32_0 : i32, i32, i32
  }
  func.func @transform_1(%arg0: i32) -> (i32, i32) {
    %c0_i32 = arith.constant 0 : i32
    %c0_i32_0 = arith.constant 0 : i32
    %c0_i32_1 = arith.constant 0 : i32
    return %c0_i32, %c0_i32_0 : i32, i32
  }
  func.func @transform_2(%arg0: i32) -> (i32, i32) {
    %c0_i32 = arith.constant 0 : i32
    %c0_i32_0 = arith.constant 0 : i32
    %c0_i32_1 = arith.constant 0 : i32
    return %c0_i32, %c0_i32_0 : i32, i32
  }
  func.func @transform_3(%arg0: i32) -> (i32, i32) {
    %c0_i32 = arith.constant 0 : i32
    %c0_i32_0 = arith.constant 0 : i32
    return %arg0, %c0_i32 : i32, i32
  }
}

</mosaic_0001>

<bundles_post_ra>
// kernel: aggregation_backbone_forward.3
= control target key start
LH: loop header
LB: loop body
LE: loop exit
PB: predicated region body
PF: predicated region fallthrough
CT: control target
= control target key end

     0   :  { %s798_s1 = inlined_call_operand.vmem [shape: bf16[256,256], index: 1, kind: input, shape index: {}]   ;;  %s799_s0 = inlined_call_operand.vmem [shape: bf16[8,16,256], index: 0, kind: input, shape index: {}]   ;;  %s800_s2 = inlined_call_operand.vmem [shape: f32[1,256], index: 2, kind: input, shape index: {}]   ;;  %s801_s3 = inlined_call_operand.vmem [shape: f32[16,256], index: 3, kind: output, shape index: {}]  }
   0x1   :  { %v547_v0 = vld [vmem:[%s798_s1 + $0x74] ss:$8 sps:$4 sm:$0xff]   ;;  %v549_v1 = vld [vmem:[%s798_s1 + $0x70] ss:$8 sps:$4 sm:$0xff]   ;;  %v550_v2 = vld [vmem:[%s798_s1 + $0x64] ss:$8 sps:$4 sm:$0xff]  }
   0x2   :  { %302 = vmatprep.subr.bf16.mxu0 %v547_v0  ;;  %515 = vmatprep.subr.bf16.mxu1 %v547_v0  ;;  %v552_v3 = vld [vmem:[%s798_s1 + $0x60] ss:$8 sps:$4 sm:$0xff]   ;;  %v553_v4 = vld [vmem:[%s798_s1 + $0x54] ss:$8 sps:$4 sm:$0xff]   ;;  %v555_v5 = vld [vmem:[%s798_s1 + $0x50] ss:$8 sps:$4 sm:$0xff]  }
   0x3   :  { %303 = vmatpush1.bf16.msra.mxu0 %v549_v1  ;;  %531 = vmatpush1.bf16.msra.mxu1 %v549_v1  ;;  %v556_v6 = vld [vmem:[%s798_s1 + $0x44] ss:$8 sps:$4 sm:$0xff]   ;;  %v558_v7 = vld [vmem:[%s798_s1 + $0x40] ss:$8 sps:$4 sm:$0xff]   ;;  %v559_v8 = vld [vmem:[%s798_s1 + $0x34] ss:$8 sps:$4 sm:$0xff]  }
   0x4   :  { %304 = vmatprep.subr.bf16.mxu0 %v550_v2  ;;  %516 = vmatprep.subr.bf16.mxu1 %v550_v2  ;;  %v561_v9 = vld [vmem:[%s798_s1 + $0x30] ss:$8 sps:$4 sm:$0xff]   ;;  %v562_v10 = vld [vmem:[%s798_s1 + $0x24] ss:$8 sps:$4 sm:$0xff]   ;;  %v564_v11 = vld [vmem:[%s798_s1 + $0x20] ss:$8 sps:$4 sm:$0xff]  }
   0x5   :  { %v565_v12 = vld [vmem:[%s798_s1 + $0x14] ss:$8 sps:$4 sm:$0xff]   ;;  %v597_v13 = vld [vmem:[%s799_s0 + $0x4] ss:$8 sps:$4 sm:$0xff]   ;;  %v567_v14 = vld [vmem:[%s798_s1 + $0x10] ss:$8 sps:$4 sm:$0xff]  }
   0x6   :  { %v600_v15 = vld [vmem:[%s799_s0 + $0x44] ss:$8 sps:$4 sm:$0xff]   ;;  %334 = vmatprep.mubr.bf16.mxu0 %v597_v13  ;;  %v570_v17 = vld [vmem:[%s798_s1] ss:$8 sps:$4 sm:$0xff]   ;;  %v571_v18 = vld [vmem:[%s798_s1 + $0xf4] ss:$8 sps:$4 sm:$0xff]  }
   0x7   :  { %305 = vmatpush1.bf16.msra.mxu0 %v552_v3  ;;  %532 = vmatpush1.bf16.msra.mxu1 %v552_v3  ;;  %v568_v16 = vld [vmem:[%s798_s1 + $0x4] ss:$8 sps:$4 sm:$0xff]   ;;  %v573_v19 = vld [vmem:[%s798_s1 + $0xf0] ss:$8 sps:$4 sm:$0xff]   ;;  %v576_v21 = vld [vmem:[%s798_s1 + $0xe0] ss:$8 sps:$4 sm:$0xff]  }
   0x8   :  { %306 = vmatprep.subr.bf16.mxu0 %v553_v4  ;;  %517 = vmatprep.subr.bf16.mxu1 %v553_v4  ;;  %v574_v20 = vld [vmem:[%s798_s1 + $0xe4] ss:$8 sps:$4 sm:$0xff]   ;;  %v577_v22 = vld [vmem:[%s798_s1 + $0xd4] ss:$8 sps:$4 sm:$0xff]   ;;  %v579_v23 = vld [vmem:[%s798_s1 + $0xd0] ss:$8 sps:$4 sm:$0xff]   ;;  %v445_v4 = vlaneseq }
   0x9   :  { %374 = vmatprep.mubr.bf16.mxu1 %v600_v15  ;;  %v580_v24 = vld [vmem:[%s798_s1 + $0xc4] ss:$8 sps:$4 sm:$0xff]   ;;  %v582_v25 = vld [vmem:[%s798_s1 + $0xc0] ss:$8 sps:$4 sm:$0xff]   ;;  %v583_v26 = vld [vmem:[%s798_s1 + $0xb4] ss:$8 sps:$4 sm:$0xff]  }
   0xa   :  { %v585_v27 = vld [vmem:[%s798_s1 + $0xb0] ss:$8 sps:$4 sm:$0xff]   ;;  %v586_v28 = vld [vmem:[%s798_s1 + $0xa4] ss:$8 sps:$4 sm:$0xff]   ;;  %v588_v29 = vld [vmem:[%s798_s1 + $0xa0] ss:$8 sps:$4 sm:$0xff]  }
   0xb   :  { %307 = vmatpush1.bf16.msra.mxu0 %v555_v5  ;;  %533 = vmatpush1.bf16.msra.mxu1 %v555_v5  ;;  %v589_v30 = vld [vmem:[%s798_s1 + $0x94] ss:$8 sps:$4 sm:$0xff]   ;;  %v591_v31 = vld [vmem:[%s798_s1 + $0x90] ss:$8 sps:$4 sm:$0xff]   ;;  %v592_v32 = vld [vmem:[%s798_s1 + $0x84] ss:$8 sps:$4 sm:$0xff]  }
   0xc   :  { %308 = vmatprep.subr.bf16.mxu0 %v556_v6  ;;  %518 = vmatprep.subr.bf16.mxu1 %v556_v6  ;;  %v594_v33 = vld [vmem:[%s798_s1 + $0x80] ss:$8 sps:$4 sm:$0xff]   ;;  %v601_v36 = vld [vmem:[%s799_s0 + $0x14] ss:$8 sps:$4 sm:$0xff]   ;;  %v603_v38 = vld [vmem:[%s799_s0 + $0x10] ss:$8 sps:$4 sm:$0xff]  }
   0xd   :  { %v595_v34 = vld [vmem:[%s799_s0] ss:$8 sps:$4 sm:$0xff]   ;;  %v604_v37 = vld [vmem:[%s799_s0 + $0x54] ss:$8 sps:$4 sm:$0xff]   ;;  %v606_v39 = vld [vmem:[%s799_s0 + $0x50] ss:$8 sps:$4 sm:$0xff]  }
   0xe   :  { %v598_v35 = vld [vmem:[%s799_s0 + $0x40] ss:$8 sps:$4 sm:$0xff]   ;;  %v607_v40 = vld [vmem:[%s799_s0 + $0x24] ss:$8 sps:$4 sm:$0xff]   ;;  %v613_v44 = vld [vmem:[%s799_s0 + $0x34] ss:$8 sps:$4 sm:$0xff]  }
   0xf   :  { %309 = vmatpush1.bf16.msra.mxu0 %v558_v7  ;;  %534 = vmatpush1.bf16.msra.mxu1 %v558_v7  ;;  %v610_v41 = vld [vmem:[%s799_s0 + $0x64] ss:$8 sps:$4 sm:$0xff]   ;;  %v609_v42 = vld [vmem:[%s799_s0 + $0x20] ss:$8 sps:$4 sm:$0xff]   ;;  %v616_v45 = vld [vmem:[%s799_s0 + $0x74] ss:$8 sps:$4 sm:$0xff]  }
  0x10   :  { %310 = vmatprep.subr.bf16.mxu0 %v559_v8  ;;  %519 = vmatprep.subr.bf16.mxu1 %v559_v8  ;;  %v612_v43 = vld [vmem:[%s799_s0 + $0x60] ss:$8 sps:$4 sm:$0xff]   ;;  %v615_v46 = vld [vmem:[%s799_s0 + $0x30] ss:$8 sps:$4 sm:$0xff]  }
  0x11   :  { %v618_v47 = vld [vmem:[%s799_s0 + $0x70] ss:$8 sps:$4 sm:$0xff]  }
  0x13   :  { %311 = vmatpush1.bf16.msra.mxu0 %v561_v9  ;;  %535 = vmatpush1.bf16.msra.mxu1 %v561_v9 }
  0x14   :  { %312 = vmatprep.subr.bf16.mxu0 %v562_v10  ;;  %520 = vmatprep.subr.bf16.mxu1 %v562_v10  ;;  %v446_v10 = vshrl.u32 %v445_v4, 7 }
  0x17   :  { %313 = vmatpush1.bf16.msra.mxu0 %v564_v11  ;;  %536 = vmatpush1.bf16.msra.mxu1 %v564_v11 }
  0x18   :  { %314 = vmatprep.subr.bf16.mxu0 %v565_v12  ;;  %521 = vmatprep.subr.bf16.mxu1 %v565_v12 }
  0x1b   :  { %315 = vmatpush1.bf16.msra.mxu0 %v567_v14  ;;  %537 = vmatpush1.bf16.msra.mxu1 %v567_v14 }
  0x1c   :  { %316 = vmatprep.subr.bf16.mxu0 %v568_v16  ;;  %522 = vmatprep.subr.bf16.mxu1 %v568_v16 }
  0x1f   :  { %317 = vmatpush1.bf16.msra.mxu0 %v570_v17  ;;  %538 = vmatpush1.bf16.msra.mxu1 %v570_v17 }
  0x20   :  { %318 = vmatprep.subr.bf16.mxu0 %v571_v18  ;;  %523 = vmatprep.subr.bf16.mxu1 %v571_v18 }
  0x23   :  { %319 = vmatpush2.bf16.msra.mxu0 %v573_v19  ;;  %539 = vmatpush2.bf16.msra.mxu1 %v573_v19  ;;  %v447_v19 = vsub.s32 0, %v446_v10 }
  0x24   :  { %320 = vmatprep.subr.bf16.mxu0 %v574_v20  ;;  %524 = vmatprep.subr.bf16.mxu1 %v574_v20 }
  0x27   :  { %321 = vmatpush2.bf16.msra.mxu0 %v576_v21  ;;  %540 = vmatpush2.bf16.msra.mxu1 %v576_v21 }
  0x28   :  { %322 = vmatprep.subr.bf16.mxu0 %v577_v22  ;;  %525 = vmatprep.subr.bf16.mxu1 %v577_v22 }
  0x2b   :  { %323 = vmatpush2.bf16.msra.mxu0 %v579_v23  ;;  %541 = vmatpush2.bf16.msra.mxu1 %v579_v23 }
  0x2c   :  { %324 = vmatprep.subr.bf16.mxu0 %v580_v24  ;;  %526 = vmatprep.subr.bf16.mxu1 %v580_v24  ;;  %v443_v24 = vld [vmem:[%s800_s2] sm:$0x3] }
  0x2f   :  { %325 = vmatpush2.bf16.msra.mxu0 %v582_v25  ;;  %542 = vmatpush2.bf16.msra.mxu1 %v582_v25 }
  0x30   :  { %326 = vmatprep.subr.bf16.mxu0 %v583_v26  ;;  %527 = vmatprep.subr.bf16.mxu1 %v583_v26  ;;  %v451_v26 = vsub.s32 1, %v446_v10 }
  0x33   :  { %327 = vmatpush2.bf16.msra.mxu0 %v585_v27  ;;  %543 = vmatpush2.bf16.msra.mxu1 %v585_v27 }
  0x34   :  { %328 = vmatprep.subr.bf16.mxu0 %v586_v28  ;;  %528 = vmatprep.subr.bf16.mxu1 %v586_v28 }
  0x37   :  { %329 = vmatpush2.bf16.msra.mxu0 %v588_v29  ;;  %544 = vmatpush2.bf16.msra.mxu1 %v588_v29 }
  0x38   :  { %330 = vmatprep.subr.bf16.mxu0 %v589_v30  ;;  %529 = vmatprep.subr.bf16.mxu1 %v589_v30 }
  0x3b   :  { %331 = vmatpush2.bf16.msra.mxu0 %v591_v31  ;;  %545 = vmatpush2.bf16.msra.mxu1 %v591_v31  ;;  %v448_v31 = vrot.slane %v443_v24, %v447_v19 }
  0x3c   :  { %332 = vmatprep.subr.bf16.mxu0 %v592_v32  ;;  %530 = vmatprep.subr.bf16.mxu1 %v592_v32 }
  0x3f   :  { %333 = vmatpush2.bf16.msra.mxu0 %v594_v33  ;;  %546 = vmatpush2.bf16.msra.mxu1 %v594_v33 }
  0x42   :  { %335 = vmatmul.mubr.bf16.vlgmr.msra.gmra.mxu0 %v595_v34  ;;  %375 = vmatmul.mubr.bf16.vlgmr.msra.gmra.mxu1 %v598_v35 }
  0x43   :  { %344 = vmatprep.mubr.bf16.mxu0 %v601_v36  ;;  %384 = vmatprep.mubr.bf16.mxu1 %v604_v37 }
  0x4a   :  { %345 = vmatmul.mubr.bf16.gmra.mxu0 %v603_v38  ;;  %385 = vmatmul.mubr.bf16.gmra.mxu1 %v606_v39  ;;  %v452_v38 = vrot.slane %v443_v24, %v451_v26 }
  0x4b   :  { %354 = vmatprep.mubr.bf16.mxu0 %v607_v40  ;;  %394 = vmatprep.mubr.bf16.mxu1 %v610_v41 }
  0x52   :  { %355 = vmatmul.mubr.bf16.gmra.mxu0 %v609_v42  ;;  %395 = vmatmul.mubr.bf16.gmra.mxu1 %v612_v43 }
  0x53   :  { %364 = vmatprep.mubr.bf16.mxu0 %v613_v44  ;;  %404 = vmatprep.mubr.bf16.mxu1 %v616_v45 }
  0x5a   :  { %365 = vmatmul.mubr.bf16.gmra.mxu0 %v615_v46  ;;  %405 = vmatmul.mubr.bf16.gmra.mxu1 %v618_v47 }
 0x102   :  { %v336_v48 = vpop.f32.mrf.mxu0  ;;  %v376_v49 = vpop.f32.mrf.mxu1 }
 0x104   :  { %v338_v50 = vpop.f32.mrf.mxu0  ;;  %v378_v51 = vpop.f32.mrf.mxu1 }
 0x106   :  { %v340_v52 = vpop.f32.mrf.mxu0  ;;  %v380_v53 = vpop.f32.mrf.mxu1 }
 0x108   :  { %v342_v54 = vpop.f32.mrf.mxu0  ;;  %v382_v55 = vpop.f32.mrf.mxu1 }
 0x10a   :  { %v346_v56 = vpop.f32.mrf.mxu0  ;;  %v386_v57 = vpop.f32.mrf.mxu1 }
 0x10b   :  { %v415_v7 = vmax.f32 %v336_v48, %v346_v56 }
 0x10c   :  { %v348_v58 = vpop.f32.mrf.mxu0  ;;  %v388_v59 = vpop.f32.mrf.mxu1 }
 0x10d   :  { %v422_v11 = vmax.f32 %v338_v50, %v348_v58 }
 0x10e   :  { %v350_v60 = vpop.f32.mrf.mxu0  ;;  %v390_v61 = vpop.f32.mrf.mxu1 }
 0x10f   :  { %v429_v14 = vmax.f32 %v340_v52, %v350_v60 }
 0x110   :  { %v352_v62 = vpop.f32.mrf.mxu0  ;;  %v392_v63 = vpop.f32.mrf.mxu1 }
 0x111   :  { %v436_v20 = vmax.f32 %v342_v54, %v352_v62 }
 0x112   :  { %v356_v0 = vpop.f32.mrf.mxu0  ;;  %v396_v1 = vpop.f32.mrf.mxu1 }
 0x113   :  { %v416_v12 = vmax.f32 %v415_v7, %v356_v0 }
 0x114   :  { %v358_v2 = vpop.f32.mrf.mxu0  ;;  %v398_v3 = vpop.f32.mrf.mxu1 }
 0x115   :  { %v423_v15 = vmax.f32 %v422_v11, %v358_v2 }
 0x116   :  { %v360_v5 = vpop.f32.mrf.mxu0  ;;  %v400_v6 = vpop.f32.mrf.mxu1 }
 0x117   :  { %v430_v21 = vmax.f32 %v429_v14, %v360_v5 }
 0x118   :  { %v362_v8 = vpop.f32.mrf.mxu0  ;;  %v402_v9 = vpop.f32.mrf.mxu1 }
 0x119   :  { %v437_v27 = vmax.f32 %v436_v20, %v362_v8 }
 0x11a   :  { %v366_v13 = vpop.f32.mrf.mxu0  ;;  %v406_v18 = vpop.f32.mrf.mxu1 }
 0x11b   :  { %v417_v16 = vmax.f32 %v416_v12, %v366_v13 }
 0x11c   :  { %v368_v17 = vpop.f32.mrf.mxu0  ;;  %v408_v32 = vpop.f32.mrf.mxu1 }
 0x11d   :  { %v418_v22 = vmax.f32 %v417_v16, %v376_v49  ;;  %v424_v23 = vmax.f32 %v423_v15, %v368_v17 }
 0x11e   :  { %v370_v25 = vpop.f32.mrf.mxu0  ;;  %v410_v43 = vpop.f32.mrf.mxu1 }
 0x11f   :  { %v425_v28 = vmax.f32 %v424_v23, %v378_v51  ;;  %v419_v29 = vmax.f32 %v418_v22, %v386_v57  ;;  %v431_v30 = vmax.f32 %v430_v21, %v370_v25 }
 0x120   :  { %v372_v33 = vpop.f32.mrf.mxu0  ;;  %v412_v51 = vpop.f32.mrf.mxu1 }
 0x121   :  { %v420_v34 = vmax.f32 %v419_v29, %v396_v1  ;;  %v432_v35 = vmax.f32 %v431_v30, %v380_v53  ;;  %v426_v36 = vmax.f32 %v425_v28, %v388_v59  ;;  %v438_v37 = vmax.f32 %v437_v27, %v372_v33 }
 0x123   :  { %v421_v39 = vmax.f32 %v420_v34, %v406_v18  ;;  %v427_v40 = vmax.f32 %v426_v36, %v398_v3  ;;  %v439_v41 = vmax.f32 %v438_v37, %v382_v55  ;;  %v433_v42 = vmax.f32 %v432_v35, %v390_v61 }
 0x125   :  { %v455_v44 = vadd.f32 %v448_v31, %v421_v39  ;;  %v428_v45 = vmax.f32 %v427_v40, %v408_v32  ;;  %v434_v46 = vmax.f32 %v433_v42, %v400_v6  ;;  %v440_v47 = vmax.f32 %v439_v41, %v392_v63 }
 0x127   :  { %459 = vst [vmem:[%s801_s3] sm:$0xff] %v455_v44  ;;  %v456_v48 = vadd.f32 %v452_v38, %v428_v45  ;;  %v435_v49 = vmax.f32 %v434_v46, %v410_v43  ;;  %v441_v50 = vmax.f32 %v440_v47, %v402_v9 }
 0x129   :  { %460 = vst [vmem:[%s801_s3 + $0x8] sm:$0xff] %v456_v48  ;;  %v457_v52 = vadd.f32 %v448_v31, %v435_v49  ;;  %v442_v53 = vmax.f32 %v441_v50, %v412_v51 }
 0x12b   :  { %461 = vst [vmem:[%s801_s3 + $0x10] sm:$0xff] %v457_v52  ;;  %v458_v54 = vadd.f32 %v452_v38, %v442_v53 }
 0x12d   :  { %462 = vst [vmem:[%s801_s3 + $0x18] sm:$0xff] %v458_v54 }

// kernel: aggregation_backbone_forward.2
= control target key start
LH: loop header
LB: loop body
LE: loop exit
PB: predicated region body
PF: predicated region fallthrough
CT: control target
= control target key end

     0   :  { %8 = vsyncpa [#allocation4], 0  ;;  %s946_s0 = inlined_call_operand.vmem [shape: bf16[8,32,64], index: 0, kind: input, shape index: {}]   ;;  %s947_s1 = inlined_call_operand.vmem [shape: bf16[64,128], index: 1, kind: input, shape index: {}]   ;;  %s948_s2 = inlined_call_operand.vmem [shape: f32[1,128], index: 2, kind: input, shape index: {}]   ;;  %s949_s3 = inlined_call_operand.hbm [shape: f32[32,128], index: 3, kind: output, shape index: {}]  }
   0x1   :  { %10 = vsyncpa [#allocation4 + $0x1], 0  ;;  %s812_s12 = smov 0   ;;  %s814_s13 = smov 0  }
   0x2   :  { %s816_s14 = smov 0   ;;  %s818_s15 = smov 0  }
   0x3 LB: > { %s592_s16 = sadd.s32 4294967295, %s787_s15   ;;  %s593_s17 = sadd.s32 4294967294, %s787_s15   ;;  %s787_s15 = sphi %s818_s15, %s955_s15   ;;  %s783_s14 = sphi %s816_s14, %s954_s14   ;;  %s779_s13 = sphi %s814_s13, %s953_s13   ;;  %s775_s12 = sphi %s812_s12, %s952_s12  }
   0x4   : > { %s835_s18 = sadd.s32 1, %s787_s15   ;;  %s23_s19 = sadd.s32 1, %s783_s14 }
   0x5   : > { %s20_s20 = ssub.s32 %s787_s15, %s835_s18  ;;  %p30_p0 = scmp.ne.s32.totalorder %s783_s14, %s779_s13 }
   0x6   : > { %p21_p1 = scmp.eq.s32.totalorder %s20_s20, 0  ;;  %p31_p2 = scmp.eq.s32.totalorder %s787_s15, 0 }
   0x7   : > { %p102_p3 = scmp.eq.s32.totalorder %s592_s16, 1  ;;  %p107_p4 = scmp.ne.s32.totalorder %s779_s13, %s775_s12 }
   0x8   : > { %s848_s21 = scalar_select %p21_p1, %s783_s14, %s23_s19  }
   0x9   : > { %p32_p5 = por %p31_p2, %p30_p0  ;;  %p850_p6 = por %p102_p3, %p30_p0 }
   0xa   : > { %p108_p7 = scmp.eq.s32.totalorder %s593_s17, 1  ;;  %p595_p9 = scmp.ge.s32.totalorder %s787_s15, 2 }
   0xc   : > { %p854_p8 = por %p108_p7, %p107_p4  ;;  %130 = sbr.rel (%p595_p9) target bundleno = 25 (0x19), region = 24 }
  0x11   : > { %133 = sbr.rel (!%p32_p5) target bundleno = 25 (0x19), region = 28  ;;  %s135_s24 = sand.u32 (%p32_p5), 1, %s783_s14  }
  0x12   : > { %s628_s25 = sshll.u32 (%p32_p5), %s787_s15, 3  ;;  %s596_s26 = sshll.u32 (%p32_p5), %s135_s24, 6 }
  0x13   : > { %s140_s29 = scalar_lea.vmem (%p32_p5), %s946_s0, %s628_s25  ;;  %s137_s30 = scalar_lea.vmem (%p32_p5), [#allocation2], %s596_s26 }
  0x14   : > { %v157_v0 = vld [vmem:[%s140_s29] sm:$0xff] (%p32_p5)   ;;  %v161_v1 = vld [vmem:[%s140_s29 + $0x10] sm:$0xff] (%p32_p5)  }
  0x15   : > { %v165_v2 = vld [vmem:[%s140_s29 + $0x20] sm:$0xff] (%p32_p5)   ;;  %158 = vst [vmem:[%s137_s30] sm:$0xff] (%p32_p5), %v157_v0   ;;  %162 = vst [vmem:[%s137_s30 + $0x8] sm:$0xff] (%p32_p5), %v161_v1   ;;  %v169_v3 = vld [vmem:[%s140_s29 + $0x30] sm:$0xff] (%p32_p5)  }
  0x16   : > { %166 = vst [vmem:[%s137_s30 + $0x10] sm:$0xff] %v165_v2   ;;  %v173_v4 = vld [vmem:[%s140_s29 + $0x40] sm:$0xff]   ;;  %v177_v5 = vld [vmem:[%s140_s29 + $0x50] sm:$0xff]   ;;  %170 = vst [vmem:[%s137_s30 + $0x18] sm:$0xff] %v169_v3  }
  0x17   : > { %174 = vst [vmem:[%s137_s30 + $0x20] sm:$0xff] %v173_v4   ;;  %178 = vst [vmem:[%s137_s30 + $0x28] sm:$0xff] %v177_v5   ;;  %v181_v6 = vld [vmem:[%s140_s29 + $0x60] sm:$0xff]   ;;  %v185_v7 = vld [vmem:[%s140_s29 + $0x70] sm:$0xff]  }
  0x18   : > { %182 = vst [vmem:[%s137_s30 + $0x30] sm:$0xff] %v181_v6   ;;  %186 = vst [vmem:[%s137_s30 + $0x38] sm:$0xff] %v185_v7  }
  0x19 PF: > { %p599_p10 = scmp.ge.s32.totalorder %s787_s15, 1  ;;  %p243_p11 = scmp.lt.s32.totalorder %s787_s15, 3 }
  0x1b   : > { %p244_p12 = pnand %p599_p10, %p243_p11 }
  0x1c   : > { %s872_s6 = sand.u32 (!%p244_p12), 1, %s779_s13   ;;  %s629_s29 = sshll.u32 (!%p244_p12), %s592_s16, 8 }
  0x1d   : > { %247 = sbr.rel (%p244_p12) target bundleno = 282 (0x11a), region = 69  ;;  %s600_s9 = sshll.u32 (!%p244_p12), %s872_s6, 6 }
  0x1e   : > { %s252_s17 = scalar_lea.vmem (!%p244_p12), [#allocation2], %s600_s9  ;;  %s601_s24 = sshll.u32 (!%p244_p12), %s872_s6, 4 }
  0x1f   : > { %s272_s27 = scalar_lea.vmem (!%p244_p12), [#allocation3], %s601_s24  ;;  %s903_s5 = scalar_lea.hbm (!%p244_p12), %s949_s3, %s629_s29 }
  0x20   : > { %s525_s28 = sshll.u32 (!%p244_p12), %s272_s27, 4  ;;  %s512_s7 = scalar_lea.sflag (!%p244_p12), [#allocation4], %s872_s6  ;;  %s898_s28 = int_to_ptr.vmem [resolvable:$true] %s525_s28 }
  0x21   : > { %s727_s8 = scalar_lea.vmem (!%p244_p12), %s898_s28, 256  ;;  %s789_s16 = smov (!%p244_p12), [#allocation3]  }
  0x22   : > { %v715_v8 = vld [vmem:[%s947_s1 + $0x18] sm:$0xff]   ;;  %v716_v9 = vld [vmem:[%s947_s1 + $0x10] sm:$0xff]   ;;  %v717_v10 = vld [vmem:[%s947_s1 + $0x8] sm:$0xff]   ;;  %vm364_vm0 = vcmask 523264   ;;  %p728_p13 = scmp.ne.s32.totalorder %s898_s28, %s727_s8  ;;  %s731_s9 = sshll.u32 %s789_s16, 4  ;;  %s732_s9 = int_to_ptr.vmem [resolvable:$false] %s731_s9 }
  0x23   : > { %642 = vmatprep.subr.bf16.mxu0 %v715_v8  ;;  %666 = vmatprep.subr.bf16.mxu1 %v715_v8  ;;  %v719_v11 = vld [vmem:[%s252_s17] sm:$0xff]   ;;  %v721_v14 = vld [vmem:[%s252_s17 + $0x8] sm:$0xff]   ;;  %v723_v16 = vld [vmem:[%s252_s17 + $0x10] sm:$0xff]   ;;  %s733_s10 = scalar_lea.vmem %s732_s9, 512  ;;  %p734_p2 = scmp.lt.s32.totalorder %s898_s28, %s732_s9 }
  0x24   : > { %643 = vmatpush3.bf16.msra.mxu0 %v715_v8  ;;  %670 = vmatpush3.bf16.msra.mxu1 %v715_v8  ;;  %v720_v12 = vld [vmem:[%s252_s17 + $0x20] sm:$0xff]   ;;  %v722_v15 = vld [vmem:[%s252_s17 + $0x28] sm:$0xff]   ;;  %v724_v17 = vld [vmem:[%s252_s17 + $0x30] sm:$0xff]   ;;  %p729_p0 = pnand %p728_p13, %p850_p6  ;;  %p735_p3 = scmp.lt.s32.totalorder %s733_s10, %s727_s8 }
  0x25   : > { %644 = vmatprep.subr.bf16.mxu0 %v716_v9  ;;  %667 = vmatprep.subr.bf16.mxu1 %v716_v9  ;;  %v718_v13 = vld [vmem:[%s947_s1] sm:$0xff]   ;;  %v725_v18 = vld [vmem:[%s252_s17 + $0x18] sm:$0xff]  }
  0x26   : > { %650 = vmatprep.mubr.msk.bf16.mxu0 %vm364_vm0, %v719_v11  ;;  %658 = vmatprep.mubr.msk.bf16.mxu1 %vm364_vm0, %v720_v12  ;;  %v726_v19 = vld [vmem:[%s252_s17 + $0x38] sm:$0xff]   ;;  %v622_v44 = vld [vmem:[%s948_s2] ss:$0 sm:$0xff]  ;;  %p730_p1 = pneg %p729_p0  ;;  %p736_p4 = por %p735_p3, %p734_p2 }
  0x28   : > { %645 = vmatpush3.bf16.msra.mxu0 %v716_v9  ;;  %671 = vmatpush3.bf16.msra.mxu1 %v716_v9  ;;  %p737_p5 = pnand %p736_p4, %p730_p1 }
  0x29   : > { %646 = vmatprep.subr.bf16.mxu0 %v717_v10  ;;  %668 = vmatprep.subr.bf16.mxu1 %v717_v10 }
  0x2c   : > { %647 = vmatpush3.bf16.msra.mxu0 %v717_v10  ;;  %672 = vmatpush3.bf16.msra.mxu1 %v717_v10 }
  0x2d   : > { %648 = vmatprep.subr.bf16.mxu0 %v718_v13  ;;  %669 = vmatprep.subr.bf16.mxu1 %v718_v13 }
  0x30   : > { %649 = vmatpush3.bf16.msra.mxu0 %v718_v13  ;;  %673 = vmatpush3.bf16.msra.mxu1 %v718_v13 }
  0x33   : > { %651 = vmatmul.mubr.msk.bf16.vlgmr.msra.gmra.mxu0 %vm364_vm0, %v721_v14  ;;  %659 = vmatmul.mubr.msk.bf16.vlgmr.msra.gmra.mxu1 %vm364_vm0, %v722_v15 }
  0x34   : > { %654 = vmatprep.mubr.msk.bf16.mxu0 %vm364_vm0, %v723_v16  ;;  %662 = vmatprep.mubr.msk.bf16.mxu1 %vm364_vm0, %v724_v17 }
  0x3b   : > { %655 = vmatmul.mubr.msk.bf16.gmra.mxu0 %vm364_vm0, %v725_v18  ;;  %663 = vmatmul.mubr.msk.bf16.gmra.mxu1 %vm364_vm0, %v726_v19 }
  0xf3   : > { %v652_v20 = vpop.f32.mrf.mxu0  ;;  %v660_v21 = vpop.f32.mrf.mxu1 }
  0xf5   : > { %v423_v22 = vpop.f32.mrf.mxu0  ;;  %v455_v23 = vpop.f32.mrf.mxu1 }
  0xf7   : > { %v653_v24 = vpop.f32.mrf.mxu0  ;;  %v661_v25 = vpop.f32.mrf.mxu1 }
  0xf9   : > { %v426_v26 = vpop.f32.mrf.mxu0  ;;  %v458_v27 = vpop.f32.mrf.mxu1 }
  0xfb   : > { %v656_v28 = vpop.f32.mrf.mxu0  ;;  %v664_v29 = vpop.f32.mrf.mxu1 }
  0xfc   : > { %v487_v30 = vmax.f32 %v652_v20, %v656_v28 }
  0xfd   : > { %v439_v31 = vpop.f32.mrf.mxu0  ;;  %v471_v32 = vpop.f32.mrf.mxu1 }
  0xfe   : > { %v489_v33 = vmax.f32 %v487_v30, %v660_v21  ;;  %v486_v34 = vmax.f32 %v423_v22, %v439_v31 }
  0xff   : > { %v657_v35 = vpop.f32.mrf.mxu0  ;;  %v665_v38 = vpop.f32.mrf.mxu1 }
 0x100   : > { %v488_v36 = vmax.f32 %v486_v34, %v455_v23  ;;  %v494_v37 = vmax.f32 %v653_v24, %v657_v35  ;;  %v491_v40 = vmax.f32 %v489_v33, %v664_v29 }
 0x101   : > { %v442_v39 = vpop.f32.mrf.mxu0  ;;  %v474_v47 = vpop.f32.mrf.mxu1 }
 0x102   : > { %v490_v41 = vmax.f32 %v488_v36, %v471_v32  ;;  %v496_v42 = vmax.f32 %v494_v37, %v661_v25  ;;  %v493_v43 = vmax.f32 %v426_v26, %v442_v39 }
 0x104   : > { %v492_v45 = vmax.f32 %v490_v41, %v491_v40  ;;  %v495_v46 = vmax.f32 %v493_v43, %v458_v27  ;;  %v498_v49 = vmax.f32 %v496_v42, %v665_v38 }
 0x106   : > { %v507_v48 = vadd.f32 %v622_v44, %v492_v45  ;;  %v497_v50 = vmax.f32 %v495_v46, %v474_v47 }
 0x108   : > { %509 = vst [vmem:[%s272_s27] sm:$0xff] %v507_v48  ;;  %v499_v51 = vmax.f32 %v497_v50, %v498_v49 }
 0x10a   : > { %v508_v52 = vadd.f32 %v622_v44, %v499_v51 }
 0x10c   : > { %510 = vst [vmem:[%s272_s27 + $0x8] sm:$0xff] %v508_v52 }
 0x10d   : > { %740 = shalt.err (!%p737_p5)
}
 0x10e   : > { %s741_s11 = scalar_lea.hbm %s903_s5, 256  ;;  %s745_s20 = scalar_lea.hbm %s949_s3, 512 }
 0x10f   : > { %p742_p7 = scmp.ne.s32.totalorder %s903_s5, %s741_s11  ;;  %p746_p12 = scmp.lt.s32.totalorder %s903_s5, %s949_s3 }
 0x110   : > { %p747_p13 = scmp.lt.s32.totalorder %s745_s20, %s741_s11 }
 0x111   : > { %p743_p10 = pnand %p742_p7, %p850_p6 }
 0x112   : > { %p748_p0 = por %p747_p13, %p746_p12 }
 0x113   : > { %p744_p11 = pneg %p743_p10 }
 0x115   : > { %p749_p1 = pnand %p748_p0, %p744_p11 }
 0x117   : > { %752 = shalt.err (!%p749_p1)
}
 0x118   : > { %s790_s26 = smov 128   ;;  %s791_s27 = smov 8  }
 0x119   : > { %674 = dma.vmem_to_hbm [thread:$0]  (%p850_p6), %s898_s28, 256, %s903_s5, %s512_s7, %s790_s26, %s790_s26, %s791_s27  }
 0x11a PF: > { %s540_s29 = sand.u32 1, %s775_s12   ;;  %p677_p2 = pnand %p595_p9, %p854_p8 }
 0x11b   : > { %s541_s30 = scalar_lea.sflag [#allocation4], %s540_s29 }
 0x11c   : > { %p678_p3 = pneg %p677_p2 }
 0x11e   : > { %770 = dma.done.wait (%p678_p3), %s541_s30, 256  }
 0x11f   : > { %772 = vsyncadd (%p678_p3), %s541_s30, 4294967040  ;;  %p13_p4 = scmp.ge.s32.totalorder %s835_s18, 4   ;;  %s952_s12 = smov %s779_s13 }
 0x120   : > { %s953_s13 = smov %s783_s14  ;;  %s954_s14 = smov %s848_s21 }
 0x121   : > { %s955_s15 = smov %s835_s18  ;;  %15 = sbr.rel (!%p13_p4) target bundleno = 3 (0x3), region = 113 }
 0x126   :  { %546 = vsyncpa [#allocation4], 1 }
 0x127   :  { %548 = vsyncpa [#allocation4 + $0x1], 1 }

</bundles_post_ra>
